<compile_context>
chip_gen: v7x
topology: tpu7x:2x2x1
jax: 0.10.0
libtpu: 0.0.40
codegen_flags: <defaults>
</compile_context>

<pallas_src>
import jax
import jax.numpy as jnp
from jax.experimental import pallas as pl
from jax.experimental.pallas import tpu as pltpu


def time2vec_kernel(x_ref, wnp_ref, bnp_ref, wp_ref, bp_ref, o_ref):
    # x_ref: (TB, 5, TS); param refs: (1, TS); o_ref: (TB, 2, TS)
    # mean over the first 4 features: pure VPU adds on lane-dense slabs.
    m = x_ref[:, 0, :] + x_ref[:, 1, :] + x_ref[:, 2, :] + x_ref[:, 3, :]  # (TB, TS)

    # Fold the 0.25 mean scale into the (1, TS) weights (broadcast over batch).
    wnp = wnp_ref[...] * 0.25
    wp = wp_ref[...] * 0.25
    bnp = bnp_ref[...]
    bp = bp_ref[...]

    # Two direct lane-dense slab stores; sin runs on the EUP slot and overlaps
    # the non-periodic channel's VPU/store work.
    o_ref[:, 0, :] = m * wnp + bnp
    o_ref[:, 1, :] = jnp.sin(m * wp + bp)


def _pick_tile(dim, preferred):
    """Largest preferred tile that evenly divides dim, else the full extent."""
    for t in preferred:
        if dim % t == 0 and t <= dim:
            return t
    return dim


def time2vector(x, w_non_periodic, b_non_periodic, w_periodic, b_periodic):
    """x: (B, S, 5) float32; params: (S,) float32. Returns (B, S, 2) float32."""
    B, S, F = x.shape
    assert F == 5, "Time2Vector expects 5 input features"

    # Lane-dense layouts: features/channels on sublanes, seq on lanes.
    xt = jnp.transpose(x, (0, 2, 1))              # (B, 5, S)
    wnp = w_non_periodic.reshape(1, S)
    bnp = b_non_periodic.reshape(1, S)
    wp = w_periodic.reshape(1, S)
    bp = b_periodic.reshape(1, S)

    # Tile sizes: seq tile must be a multiple of 128 or the full extent;
    # kept modest so double-buffered tiles fit v5e's 16 MiB scoped VMEM and
    # v7x's 64 MiB physical VMEM with ample headroom.
    TS = _pick_tile(S, (512, 256, 128))
    TB = _pick_tile(B, (8, 4, 2, 1))
    grid = (B // TB, S // TS)

    x_spec = pl.BlockSpec((TB, F, TS), lambda i, j: (i, 0, j))
    p_spec = pl.BlockSpec((1, TS), lambda i, j: (0, j))
    o_spec = pl.BlockSpec((TB, 2, TS), lambda i, j: (i, 0, j))

    out_t = pl.pallas_call(
        time2vec_kernel,
        out_shape=jax.ShapeDtypeStruct((B, 2, S), jnp.float32),
        grid=grid,
        in_specs=[x_spec, p_spec, p_spec, p_spec, p_spec],
        out_specs=o_spec,
        compiler_params=pltpu.CompilerParams(
            dimension_semantics=("parallel", "parallel"),
        ),
    )(xt, wnp, bnp, wp, bp)

    # Back to the PyTorch layout (B, S, 2).
    return jnp.transpose(out_t, (0, 2, 1))


def time2vector_ref(x, wnp, bnp, wp, bp):
    m = jnp.mean(x[:, :, 0:4], axis=-1)
    t_np = m * wnp + bnp
    t_p = jnp.sin(m * wp + bp)
    return jnp.stack([t_np, t_p], axis=-1)


if __name__ == "__main__":
    B, S = 2, 8  # small shapes consistent with [batch_size, seq_len, 5]

    key = jax.random.PRNGKey(0)
    k_x, k_wnp, k_bnp, k_wp, k_bp = jax.random.split(key, 5)

    x = jax.random.normal(k_x, (B, S, 5), dtype=jnp.float32)
    # deterministic "randn" parameters, matching nn.Parameter(torch.randn(seq_len))
    w_non_periodic = jax.random.normal(k_wnp, (S,), dtype=jnp.float32)
    b_non_periodic = jax.random.normal(k_bnp, (S,), dtype=jnp.float32)
    w_periodic = jax.random.normal(k_wp, (S,), dtype=jnp.float32)
    b_periodic = jax.random.normal(k_bp, (S,), dtype=jnp.float32)

    out = time2vector(x, w_non_periodic, b_non_periodic, w_periodic, b_periodic)
    out = jax.block_until_ready(out)

    ref = time2vector_ref(x, w_non_periodic, b_non_periodic, w_periodic, b_periodic)
    assert out.shape == (B, S, 2)
    assert jnp.allclose(out, ref, atol=1e-5, rtol=1e-5), "mismatch vs JAX reference"

    print("KERNEL_OK")
</pallas_src>

<mosaic_0001>
module attributes {stable_mosaic.version = 11 : i64} {
  func.func @time2vec_kernel(%arg0: i32, %arg1: i32, %arg2: memref<2x5x8xf32, #tpu.memory_space<vmem>>, %arg3: memref<1x8xf32, #tpu.memory_space<vmem>>, %arg4: memref<1x8xf32, #tpu.memory_space<vmem>>, %arg5: memref<1x8xf32, #tpu.memory_space<vmem>>, %arg6: memref<1x8xf32, #tpu.memory_space<vmem>>, %arg7: memref<2x2x8xf32, #tpu.memory_space<vmem>>) attributes {dimension_semantics = [#tpu.dimension_semantics<parallel>, #tpu.dimension_semantics<parallel>], iteration_bounds = array<i64: 1, 1>, scalar_prefetch = 0 : i64, scratch_operands = 0 : i64, tpu.core_type = #tpu.core_type<tc>, window_params = [{transform_indices = @transform_0, window_bounds = array<i64: 2, 5, 8>}, {transform_indices = @transform_1, window_bounds = array<i64: 1, 8>}, {transform_indices = @transform_2, window_bounds = array<i64: 1, 8>}, {transform_indices = @transform_3, window_bounds = array<i64: 1, 8>}, {transform_indices = @transform_4, window_bounds = array<i64: 1, 8>}, {transform_indices = @transform_5, window_bounds = array<i64: 2, 2, 8>}]} {
    %c0 = arith.constant 0 : index
    %c0_0 = arith.constant 0 : index
    %c0_1 = arith.constant 0 : index
    %0 = vector.load %arg2[%c0, %c0_0, %c0_1] : memref<2x5x8xf32, #tpu.memory_space<vmem>>, vector<2x1x8xf32>
    %1 = vector.shape_cast %0 : vector<2x1x8xf32> to vector<2x8xf32>
    %c0_2 = arith.constant 0 : index
    %c1 = arith.constant 1 : index
    %c0_3 = arith.constant 0 : index
    %2 = vector.load %arg2[%c0_2, %c1, %c0_3] : memref<2x5x8xf32, #tpu.memory_space<vmem>>, vector<2x1x8xf32>
    %3 = vector.shape_cast %2 : vector<2x1x8xf32> to vector<2x8xf32>
    %4 = arith.addf %1, %3 : vector<2x8xf32>
    %c0_4 = arith.constant 0 : index
    %c2 = arith.constant 2 : index
    %c0_5 = arith.constant 0 : index
    %5 = vector.load %arg2[%c0_4, %c2, %c0_5] : memref<2x5x8xf32, #tpu.memory_space<vmem>>, vector<2x1x8xf32>
    %6 = vector.shape_cast %5 : vector<2x1x8xf32> to vector<2x8xf32>
    %7 = arith.addf %4, %6 : vector<2x8xf32>
    %c0_6 = arith.constant 0 : index
    %c3 = arith.constant 3 : index
    %c0_7 = arith.constant 0 : index
    %8 = vector.load %arg2[%c0_6, %c3, %c0_7] : memref<2x5x8xf32, #tpu.memory_space<vmem>>, vector<2x1x8xf32>
    %9 = vector.shape_cast %8 : vector<2x1x8xf32> to vector<2x8xf32>
    %10 = arith.addf %7, %9 : vector<2x8xf32>
    %c0_8 = arith.constant 0 : index
    %c0_9 = arith.constant 0 : index
    %11 = vector.load %arg3[%c0_8, %c0_9] : memref<1x8xf32, #tpu.memory_space<vmem>>, vector<1x8xf32>
    %cst = arith.constant 2.500000e-01 : f32
    %12 = vector.broadcast %cst : f32 to vector<1x8xf32>
    %13 = arith.mulf %11, %12 : vector<1x8xf32>
    %c0_10 = arith.constant 0 : index
    %c0_11 = arith.constant 0 : index
    %14 = vector.load %arg5[%c0_10, %c0_11] : memref<1x8xf32, #tpu.memory_space<vmem>>, vector<1x8xf32>
    %cst_12 = arith.constant 2.500000e-01 : f32
    %15 = vector.broadcast %cst_12 : f32 to vector<1x8xf32>
    %16 = arith.mulf %14, %15 : vector<1x8xf32>
    %c0_13 = arith.constant 0 : index
    %c0_14 = arith.constant 0 : index
    %17 = vector.load %arg4[%c0_13, %c0_14] : memref<1x8xf32, #tpu.memory_space<vmem>>, vector<1x8xf32>
    %c0_15 = arith.constant 0 : index
    %c0_16 = arith.constant 0 : index
    %18 = vector.load %arg6[%c0_15, %c0_16] : memref<1x8xf32, #tpu.memory_space<vmem>>, vector<1x8xf32>
    %19 = vector.broadcast %13 : vector<1x8xf32> to vector<2x8xf32>
    %20 = arith.mulf %10, %19 : vector<2x8xf32>
    %21 = vector.broadcast %17 : vector<1x8xf32> to vector<2x8xf32>
    %22 = arith.addf %20, %21 : vector<2x8xf32>
    %c0_17 = arith.constant 0 : index
    %c0_18 = arith.constant 0 : index
    %c0_19 = arith.constant 0 : index
    %23 = vector.load %arg7[%c0_17, %c0_18, %c0_19] : memref<2x2x8xf32, #tpu.memory_space<vmem>>, vector<2x1x8xf32>
    %24 = vector.shape_cast %23 : vector<2x1x8xf32> to vector<2x8xf32>
    %25 = vector.shape_cast %22 : vector<2x8xf32> to vector<2x1x8xf32>
    tpu.vector_store %arg7[%c0_17, %c0_18, %c0_19], %25 {strides = array<i32>} : memref<2x2x8xf32, #tpu.memory_space<vmem>>, vector<2x1x8xf32>,
    %26 = vector.broadcast %16 : vector<1x8xf32> to vector<2x8xf32>
    %27 = arith.mulf %10, %26 : vector<2x8xf32>
    %28 = vector.broadcast %18 : vector<1x8xf32> to vector<2x8xf32>
    %29 = arith.addf %27, %28 : vector<2x8xf32>
    %30 = math.sin %29 : vector<2x8xf32>
    %c0_20 = arith.constant 0 : index
    %c1_21 = arith.constant 1 : index
    %c0_22 = arith.constant 0 : index
    %31 = vector.load %arg7[%c0_20, %c1_21, %c0_22] : memref<2x2x8xf32, #tpu.memory_space<vmem>>, vector<2x1x8xf32>
    %32 = vector.shape_cast %31 : vector<2x1x8xf32> to vector<2x8xf32>
    %33 = vector.shape_cast %30 : vector<2x8xf32> to vector<2x1x8xf32>
    tpu.vector_store %arg7[%c0_20, %c1_21, %c0_22], %33 {strides = array<i32>} : memref<2x2x8xf32, #tpu.memory_space<vmem>>, vector<2x1x8xf32>,
    return
  }
  func.func @transform_0(%arg0: i32, %arg1: i32) -> (i32, i32, i32) {
    %c0_i32 = arith.constant 0 : i32
    %c0_i32_0 = arith.constant 0 : i32
    return %arg0, %c0_i32, %arg1 : i32, i32, i32
  }
  func.func @transform_1(%arg0: i32, %arg1: i32) -> (i32, i32) {
    %c0_i32 = arith.constant 0 : i32
    %c0_i32_0 = arith.constant 0 : i32
    return %c0_i32, %arg1 : i32, i32
  }
  func.func @transform_2(%arg0: i32, %arg1: i32) -> (i32, i32) {
    %c0_i32 = arith.constant 0 : i32
    %c0_i32_0 = arith.constant 0 : i32
    return %c0_i32, %arg1 : i32, i32
  }
  func.func @transform_3(%arg0: i32, %arg1: i32) -> (i32, i32) {
    %c0_i32 = arith.constant 0 : i32
    %c0_i32_0 = arith.constant 0 : i32
    return %c0_i32, %arg1 : i32, i32
  }
  func.func @transform_4(%arg0: i32, %arg1: i32) -> (i32, i32) {
    %c0_i32 = arith.constant 0 : i32
    %c0_i32_0 = arith.constant 0 : i32
    return %c0_i32, %arg1 : i32, i32
  }
  func.func @transform_5(%arg0: i32, %arg1: i32) -> (i32, i32, i32) {
    %c0_i32 = arith.constant 0 : i32
    %c0_i32_0 = arith.constant 0 : i32
    return %arg0, %c0_i32, %arg1 : i32, i32, i32
  }
}

</mosaic_0001>

<bundles_post_ra>
// kernel: tpu_custom_call.1
= control target key start
LH: loop header
LB: loop body
LE: loop exit
PB: predicated region body
PF: predicated region fallthrough
CT: control target
= control target key end

     0   :  { %v42_v3 = vlaneseq  ;;  %s525_s0 = inlined_call_operand.vmem [shape: f32[2,5,8], index: 0, kind: input, shape index: {}]   ;;  %s526_s1 = inlined_call_operand.vmem [shape: f32[1,8], index: 1, kind: input, shape index: {}]   ;;  %s527_s2 = inlined_call_operand.vmem [shape: f32[1,8], index: 2, kind: input, shape index: {}]   ;;  %s528_s3 = inlined_call_operand.vmem [shape: f32[1,8], index: 3, kind: input, shape index: {}]   ;;  %s529_s4 = inlined_call_operand.vmem [shape: f32[1,8], index: 4, kind: input, shape index: {}]   ;;  %s530_s5 = inlined_call_operand.hbm [shape: f32[2,2,8], index: 5, kind: output, shape index: {}]  }
   0x1   :  { %v21_v0 = vld [vmem:[%s525_s0] sm:$0x1]  ;;  %v23_v1 = vld [vmem:[%s525_s0 + $0x1] sm:$0x1]  ;;  %v27_v2 = vld [vmem:[%s525_s0 + $0x2] sm:$0x1] }
   0x2   :  { %v25_v4 = vadd.f32 %v23_v1, %v21_v0  ;;  %v35_v5 = vld [vmem:[%s526_s1] sm:$0x1]  ;;  %v31_v7 = vld [vmem:[%s525_s0 + $0x3] sm:$0x1]  ;;  %v43_v11 = vshrl.u32 %v42_v3, 7 }
   0x3   :  { %v37_v6 = vld [vmem:[%s528_s3] sm:$0x1]  ;;  %v36_v8 = vmul.f32 0.25, %v35_v5  ;;  %v22_v12 = vld [vmem:[%s525_s0 + $0x8] sm:$0x1] }
   0x4   :  { %v29_v9 = vadd.f32 %v27_v2, %v25_v4  ;;  %v38_v10 = vmul.f32 0.25, %v37_v6  ;;  %v24_v13 = vld [vmem:[%s525_s0 + $0x9] sm:$0x1]  ;;  %v28_v15 = vld [vmem:[%s525_s0 + $0xa] sm:$0x1]  ;;  %v44_v17 = vsub.s32 0, %v43_v11 }
   0x5   :  { %v26_v14 = vadd.f32 %v24_v13, %v22_v12  ;;  %v32_v18 = vld [vmem:[%s525_s0 + $0xb] sm:$0x1] }
   0x6   :  { %v33_v16 = vadd.f32 %v31_v7, %v29_v9  ;;  %v45_v20 = vrot.slane %v36_v8, %v44_v17  ;;  %v64_v21 = vrot.slane %v38_v10, %v44_v17 }
   0x7   :  { %v30_v19 = vadd.f32 %v28_v15, %v26_v14 }
   0x8   :  { %10 = vsyncpa [#allocation3], 0  ;;  %v302_v22 = vld [vmem:[%s527_s2] ss:$0 sm:$0xff]  ;;  %v47_v25 = vmul.f32 %v45_v20, %v33_v16  ;;  %v66_v26 = vmul.f32 %v64_v21, %v33_v16  ;;  %vm57_vm0 = vcmask 57344   ;;  %s367_s0 = smov [#allocation2]  }
   0x9   :  { %v303_v23 = vld [vmem:[%s529_s4] ss:$0 sm:$0xff]  ;;  %v34_v24 = vadd.f32 %v32_v18, %v30_v19  ;;  %v361_v55 = vmov 683565275   ;;  %v362_v57 = vmov 2475754826  }
   0xa   :  { %v55_v29 = vadd.f32 %v302_v22, %v47_v25  ;;  %v436_v30 = vadd.f32 %v303_v23, %v66_v26  ;;  %v363_v59 = vmov 2131351028   ;;  %v364_v63 = vmov 2102212464   ;;  %s291_s2 = sshll.u32 %s367_s0, 4  ;;  %s292_s2 = int_to_ptr.vmem [resolvable:$true] %s291_s2 }
   0xb   :  { %v48_v27 = vmul.f32 %v45_v20, %v34_v24  ;;  %v67_v28 = vmul.f32 %v64_v21, %v34_v24  ;;  %v365_v1 = vmov 920167782   ;;  %v366_v8 = vmov 1326507024   ;;  %s337_s4 = scalar_lea.vmem %s292_s2, 64  ;;  %p342_p1 = scmp.lt.s32.totalorder %s292_s2, %s292_s2 }
   0xc   :  { %58 = vst.msk [vmem:[#allocation2] sm:$0x1] %vm57_vm0, %v55_v29  ;;  %v79_v33 = vand.u32 2139095040, %v436_v30  ;;  %v76_v34 = vand.u32 2147483647, %v436_v30  ;;  %vm78_vm15 = vcmp.lt.s32.totalorder %v436_v30, 0  ;;  %p338_p0 = scmp.ne.s32.totalorder %s292_s2, %s337_s4  ;;  %p343_p2 = scmp.lt.s32.totalorder %s337_s4, %s337_s4 }
   0xd   :  { %v56_v31 = vadd.f32 %v302_v22, %v48_v27  ;;  %v438_v32 = vadd.f32 %v303_v23, %v67_v28 }
   0xe   :  { %v80_v37 = vshrl.u32 %v79_v33, 23  ;;  %v83_v39 = vand.u32 8388607, %v76_v34  ;;  %p344_p3 = por %p343_p2, %p342_p1 }
   0xf   :  { %59 = vst.msk [vmem:[#allocation2 + $0x2] sm:$0x1] %vm57_vm0, %v56_v31  ;;  %v183_v35 = vand.u32 2139095040, %v438_v32  ;;  %v180_v36 = vand.u32 2147483647, %v438_v32 }
  0x10   :  { %v304_v41 = vadd.s32 4294967169, %v80_v37  ;;  %v84_v45 = vor.u32 8388608, %v83_v39  ;;  %p345_p4 = pnand %p344_p3, %p338_p0 }
  0x11   :  { %v184_v38 = vshrl.u32 %v183_v35, 23  ;;  %v187_v40 = vand.u32 8388607, %v180_v36 }
  0x12   :  { %v86_v43 = vadd.s32 1, %v304_v41  ;;  %v450_v52 = vshll.u32 %v84_v45, 8 }
  0x13   :  { %v308_v42 = vadd.s32 4294967169, %v184_v38  ;;  %v188_v46 = vor.u32 8388608, %v187_v40 }
  0x14   :  { %vm87_vm1 = vcmp.gt.s32.totalorder %v86_v43, 0 }
  0x15   :  { %v190_v44 = vadd.s32 1, %v308_v42  ;;  %v88_v47 = vsel %vm87_vm1, %v86_v43, 0  ;;  %v452_v53 = vshll.u32 %v188_v46, 8  ;;  %vm77_vm1 = vcmp.le.f32.partialorder %v76_v34, 0.7853982 }
  0x16   :  { %v90_v48 = vand.u32 31, %v88_v47  ;;  %v89_v50 = vshrl.u32 %v88_v47, 5 }
  0x17   :  { %vm191_vm2 = vcmp.gt.s32.totalorder %v190_v44, 0 }
  0x18   :  { %v192_v49 = vsel %vm191_vm2, %v190_v44, 0  ;;  %v91_v54 = vsub.s32 32, %v90_v48  ;;  %v93_v56 = vshll.u32 %v361_v55, %v90_v48  ;;  %v96_v58 = vshll.u32 %v362_v57, %v90_v48 }
  0x19   :  { %v194_v51 = vand.u32 31, %v192_v49  ;;  %v99_v60 = vshll.u32 %v363_v59, %v90_v48  ;;  %v454_v61 = vshrl.u32 %v192_v49, 5  ;;  %v102_v0 = vshll.u32 %v364_v63, %v90_v48 }
  0x1a   :  { %v105_v2 = vshll.u32 %v365_v1, %v90_v48  ;;  %v92_v3 = vshrl.u32 %v361_v55, %v91_v54  ;;  %v94_v4 = vshrl.u32 %v362_v57, %v91_v54  ;;  %v97_v5 = vshrl.u32 %v363_v59, %v91_v54 }
  0x1b   :  { %v195_v62 = vsub.s32 32, %v194_v51  ;;  %v100_v6 = vshrl.u32 %v364_v63, %v91_v54  ;;  %v103_v7 = vshrl.u32 %v365_v1, %v91_v54  ;;  %v106_v9 = vshrl.u32 %v366_v8, %v91_v54 }
  0x1c   :  { %vm108_vm3 = vcmp.lt.s32.totalorder %v89_v50, 1  ;;  %vm109_vm4 = vcmp.lt.s32.totalorder %v89_v50, 2  ;;  %v95_v10 = vor.u32 %v94_v4, %v93_v56  ;;  %v98_v11 = vor.u32 %v97_v5, %v96_v58 }
  0x1d   :  { %v101_v12 = vor.u32 %v100_v6, %v99_v60  ;;  %vm111_vm5 = vcmp.lt.s32.totalorder %v89_v50, 4  ;;  %v104_v13 = vor.u32 %v103_v7, %v102_v0  ;;  %v107_v14 = vor.u32 %v106_v9, %v105_v2 }
  0x1e   :  { %vm110_vm6 = vcmp.lt.s32.totalorder %v89_v50, 3  ;;  %v197_v15 = vshll.u32 %v361_v55, %v194_v51  ;;  %v112_v16 = vsel %vm108_vm3, %v92_v3, %v95_v10  ;;  %v116_v18 = vsel %vm108_vm3, %v95_v10, %v98_v11 }
  0x1f   :  { %v113_v17 = vsel %vm111_vm5, %v101_v12, 2102212464  ;;  %v120_v19 = vsel %vm108_vm3, %v98_v11, %v101_v12  ;;  %v117_v21 = vsel %vm111_vm5, %v104_v13, 920167782  ;;  %v121_v22 = vsel %vm111_vm5, %v107_v14, 1326507024 }
  0x20   :  { %v114_v20 = vsel %vm110_vm6, %v98_v11, %v113_v17  ;;  %v198_v23 = vshrl.u32 %v362_v57, %v195_v62  ;;  %v118_v25 = vsel %vm110_vm6, %v101_v12, %v117_v21  ;;  %v122_v26 = vsel %vm110_vm6, %v104_v13, %v121_v22 }
  0x21   :  { %v115_v24 = vsel %vm109_vm4, %v112_v16, %v114_v20  ;;  %v196_v27 = vshrl.u32 %v361_v55, %v195_v62  ;;  %v119_v28 = vsel %vm109_vm4, %v116_v18, %v118_v25  ;;  %v123_v29 = vsel %vm109_vm4, %v120_v19, %v122_v26 }
  0x22   :  { %v199_v31 = vor.u32 %v198_v23, %v197_v15  ;;  %v200_v33 = vshll.u32 %v362_v57, %v194_v51  ;;  %v460_v35 = vmul.u32.u64.low %v450_v52, %v123_v29  ;;  %v461_v37 = vmul.u32.u64.high %v450_v52, %v123_v29, %v460_v35 }
  0x23   :  { %v464_v38 = vmul.u32.u64.low %v450_v52, %v119_v28  ;;  %v465_v39 = vmul.u32.u64.high %v450_v52, %v119_v28, %v464_v38  ;;  %v201_v40 = vshrl.u32 %v363_v59, %v195_v62  ;;  %v203_v41 = vshll.u32 %v363_v59, %v194_v51 }
  0x24   :  { %v204_v42 = vshrl.u32 %v364_v63, %v195_v62  ;;  %v206_v43 = vshll.u32 %v364_v63, %v194_v51  ;;  %v207_v44 = vshrl.u32 %v365_v1, %v195_v62  ;;  %v209_v45 = vshll.u32 %v365_v1, %v194_v51 }
  0x25   :  { %v210_v46 = vshrl.u32 %v366_v8, %v195_v62  ;;  %vm212_vm7 = vcmp.lt.s32.totalorder %v454_v61, 1  ;;  %v131_v47 = vmul.u32 %v450_v52, %v115_v24  ;;  %v202_v48 = vor.u32 %v201_v40, %v200_v33 }
  0x26   :  { %v205_v49 = vor.u32 %v204_v42, %v203_v41  ;;  %vm213_vm8 = vcmp.lt.s32.totalorder %v454_v61, 2  ;;  %vm133_vm9 = vc.u32 %v461_v37, %v464_v38  ;;  %v134_v50 = vadd.s32 1, %v465_v39 }
  0x27   :  { %v208_v54 = vor.u32 %v207_v44, %v206_v43  ;;  %vm214_vm10 = vcmp.lt.s32.totalorder %v454_v61, 3  ;;  %v211_v55 = vor.u32 %v210_v46, %v209_v45  ;;  %vm215_vm11 = vcmp.lt.s32.totalorder %v454_v61, 4 }
  0x28   :  { %v216_v51 = vsel %vm212_vm7, %v196_v27, %v199_v31  ;;  %v220_v52 = vsel %vm212_vm7, %v199_v31, %v202_v48  ;;  %v135_v56 = vsel %vm133_vm9, %v134_v50, %v465_v39  ;;  %v217_v57 = vsel %vm215_vm11, %v205_v49, 2102212464 }
  0x29   :  { %v221_v58 = vsel %vm215_vm11, %v208_v54, 920167782  ;;  %v224_v59 = vsel %vm212_vm7, %v202_v48, %v205_v49  ;;  %v136_v60 = vadd.s32 %v135_v56, %v131_v47  ;;  %v218_v62 = vsel %vm214_vm10, %v202_v48, %v217_v57 }
  0x2a   :  { %v222_v63 = vsel %vm214_vm10, %v205_v49, %v221_v58  ;;  %v225_v0 = vsel %vm215_vm11, %v211_v55, 1326507024  ;;  %v219_v1 = vsel %vm213_vm8, %v216_v51, %v218_v62  ;;  %v132_v24 = vadd.s32 %v464_v38, %v461_v37 }
  0x2b   :  { %v223_v2 = vsel %vm213_vm8, %v220_v52, %v222_v63  ;;  %v226_v3 = vsel %vm214_vm10, %v208_v54, %v225_v0  ;;  %v137_v4 = vadd.s32 536870912, %v136_v60  ;;  %v235_v11 = vmul.u32 %v452_v53, %v219_v1 }
  0x2c   :  { %v227_v5 = vsel %vm213_vm8, %v224_v59, %v226_v3  ;;  %v488_v6 = vmul.u32.u64.low %v452_v53, %v223_v2  ;;  %v489_v7 = vmul.u32.u64.high %v452_v53, %v223_v2, %v488_v6  ;;  %vm182_vm2 = vcmp.lt.s32.totalorder %v438_v32, 0 }
  0x2d   :  { %v492_v8 = vmul.u32.u64.low %v452_v53, %v227_v5  ;;  %v493_v9 = vmul.u32.u64.high %v452_v53, %v227_v5, %v492_v8  ;;  %v138_v10 = vshrl.u32 %v137_v4, 30  ;;  %vm181_vm3 = vcmp.le.f32.partialorder %v180_v36, 0.7853982 }
  0x2e   :  { %v238_v13 = vadd.s32 1, %v489_v7  ;;  %vm168_vm7 = vweird.f32 %v436_v30  ;;  %vm272_vm11 = vweird.f32 %v438_v32 }
  0x2f   :  { %v139_v12 = vshll.u32 %v138_v10, 30  ;;  %vm237_vm12 = vc.u32 %v493_v9, %v488_v6  ;;  %v236_v44 = vadd.s32 %v488_v6, %v493_v9  ;;  %v162_v37 = vsub.s32 4, %v138_v10 }
  0x30   :  { %v239_v61 = vsel %vm237_vm12, %v238_v13, %v489_v7 }
  0x31   :  { %v140_v14 = vsub.s32 %v136_v60, %v139_v12  ;;  %v240_v15 = vadd.s32 %v239_v61, %v235_v11  ;;  %v163_v51 = vsel %vm78_vm15, %v162_v37, %v138_v10 }
  0x32   :  { %v165_v59 = vsel %vm77_vm1, 0, %v163_v51 }
  0x33   :  { %v142_v16 = vsub.s32 0, %v140_v14  ;;  %v241_v17 = vadd.s32 536870912, %v240_v15  ;;  %v169_v1 = vadd.s32 3, %v165_v59 }
  0x35   :  { %v305_v18 = vmin.u32 %v142_v16, %v140_v14  ;;  %v242_v19 = vshrl.u32 %v241_v17, 30  ;;  %v170_v4 = vand.u32 3, %v169_v1 }
  0x37   :  { %v144_v20 = vclz %v305_v18  ;;  %v243_v21 = vshll.u32 %v242_v19, 30  ;;  %v266_v0 = vsub.s32 4, %v242_v19  ;;  %vm175_vm4 = vcmp.eq.s32.totalorder %v170_v4, 2 }
  0x38   :  { %vm172_vm5 = vcmp.eq.s32.totalorder %v170_v4, 0  ;;  %vm171_vm6 = vcmp.lt.s32.totalorder %v170_v4, 2 }
  0x39   :  { %v306_v22 = vadd.s32 4294967294, %v144_v20  ;;  %v244_v23 = vsub.s32 %v240_v15, %v243_v21  ;;  %v267_v3 = vsel %vm182_vm2, %v266_v0, %v242_v19 }
  0x3a   :  { %v269_v7 = vsel %vm181_vm3, 0, %v267_v3 }
  0x3b   :  { %vm307_vm13 = vcmp.lt.s32.totalorder %v306_v22, 0  ;;  %v246_v25 = vsub.s32 0, %v244_v23  ;;  %v273_v11 = vadd.s32 3, %v269_v7 }
  0x3c   :  { %v147_v53 = vsel %vm307_vm13, 0, %v306_v22 }
  0x3d   :  { %v148_v26 = vsub.s32 32, %v147_v53  ;;  %v149_v27 = vshll.u32 %v140_v14, %v147_v53  ;;  %v152_v28 = vsub.s32 4294967266, %v147_v53  ;;  %v309_v29 = vmin.u32 %v246_v25, %v244_v23 }
  0x3e   :  { %v274_v61 = vand.u32 3, %v273_v11 }
  0x3f   :  { %v150_v31 = vshrl.u32 %v132_v24, %v148_v26  ;;  %v153_v33 = vadd.s32 127, %v152_v28  ;;  %v248_v35 = vclz %v309_v29 }
  0x40   :  { %vm279_vm8 = vcmp.eq.s32.totalorder %v274_v61, 2  ;;  %vm276_vm9 = vcmp.eq.s32.totalorder %v274_v61, 0  ;;  %vm275_vm10 = vcmp.lt.s32.totalorder %v274_v61, 2 }
  0x41   :  { %v151_v39 = vor.u32 %v150_v31, %v149_v27  ;;  %v154_v40 = vshll.u32 %v153_v33, 23  ;;  %v310_v41 = vadd.s32 4294967294, %v248_v35 }
  0x43   :  { %v155_v42 = vor.u32 4788187, %v154_v40  ;;  %v158_v43 = vcvt.s32.f32 %v151_v39  ;;  %vm311_vm14 = vcmp.lt.s32.totalorder %v310_v41, 0 }
  0x44   :  { %v251_v38 = vsel %vm311_vm14, 0, %v310_v41 }
  0x45   :  { %v156_v45 = vand.u32 2147483647, %v155_v42  ;;  %v252_v46 = vsub.s32 32, %v251_v38  ;;  %v253_v47 = vshll.u32 %v244_v23, %v251_v38  ;;  %v256_v48 = vsub.s32 4294967266, %v251_v38 }
  0x47   :  { %v159_v49 = vmul.f32 %v158_v43, %v156_v45  ;;  %v254_v50 = vshrl.u32 %v236_v44, %v252_v46  ;;  %v257_v54 = vadd.s32 127, %v256_v48 }
  0x49   :  { %v160_v55 = vxor.u32 2147483648, %v159_v49  ;;  %v255_v52 = vor.u32 %v254_v50, %v253_v47  ;;  %v258_v56 = vshll.u32 %v257_v54, 23 }
  0x4b   :  { %v161_v57 = vsel %vm78_vm15, %v160_v55, %v159_v49  ;;  %v259_v60 = vor.u32 4788187, %v258_v56  ;;  %v262_v62 = vcvt.s32.f32 %v255_v52 }
  0x4c   :  { %v164_v58 = vsel %vm77_vm1, %v436_v30, %v161_v57 }
  0x4d   :  { %329 = vcosq.f32 %v164_v58  ;;  %v260_v63 = vand.u32 2147483647, %v259_v60 }
  0x4e   :  { %331 = vsinq.f32 %v164_v58 }
  0x4f   :  { %v263_v2 = vmul.f32 %v262_v62, %v260_v63 }
  0x51   :  { %v264_v34 = vxor.u32 2147483648, %v263_v2 }
  0x53   :  { %v265_v5 = vsel %vm182_vm2, %v264_v34, %v263_v2 }
  0x54   :  { %v268_v6 = vsel %vm181_vm3, %v438_v32, %v265_v5 }
  0x55   :  { %333 = vcosq.f32 %v268_v6 }
  0x56   :  { %335 = vsinq.f32 %v268_v6 }
  0x57   :  { %v330_v8 = vpop.eup %329 }
  0x58   :  { %v332_v9 = vpop.eup %331  ;;  %v176_v10 = vxor.u32 2147483648, %v330_v8 }
  0x59   :  { %v173_v12 = vxor.u32 2147483648, %v332_v9 }
  0x5a   :  { %v177_v36 = vsel %vm175_vm4, %v176_v10, %v332_v9 }
  0x5b   :  { %v174_v13 = vsel %vm172_vm5, %v330_v8, %v173_v12 }
  0x5c   :  { %v178_v14 = vsel %vm171_vm6, %v174_v13, %v177_v36 }
  0x5d   :  { %v179_v15 = vsel %vm168_vm7, nan, %v178_v14 }
  0x5e   :  { %284 = vst.msk [vmem:[#allocation2 + $0x1] sm:$0x1] %vm57_vm0, %v179_v15 }
  0x5f   :  { %v334_v16 = vpop.eup %333 }
  0x60   :  { %v336_v17 = vpop.eup %335  ;;  %v280_v18 = vxor.u32 2147483648, %v334_v16 }
  0x61   :  { %v277_v19 = vxor.u32 2147483648, %v336_v17 }
  0x62   :  { %v281_v20 = vsel %vm279_vm8, %v280_v18, %v336_v17 }
  0x63   :  { %v278_v30 = vsel %vm276_vm9, %v334_v16, %v277_v19 }
  0x64   :  { %v282_v21 = vsel %vm275_vm10, %v278_v30, %v281_v20 }
  0x65   :  { %v283_v22 = vsel %vm272_vm11, nan, %v282_v21 }
  0x66   :  { %285 = vst.msk [vmem:[#allocation2 + $0x3] sm:$0x1] %vm57_vm0, %v283_v22 }
  0x67   :  { %348 = shalt.err (!%p345_p4)
}
  0x68   :  { %s349_s17 = scalar_lea.hbm %s530_s5, 64 }
  0x69   :  { %p350_p5 = scmp.ne.s32.totalorder %s530_s5, %s349_s17  ;;  %p353_p6 = scmp.lt.u32.totalorder %s349_s17, %s530_s5 }
  0x6b   :  { %p355_p7 = pnand %p353_p6, %p350_p5 }
  0x6d   :  { %358 = shalt.err (!%p355_p7)
}
  0x6e   :  { %s368_s22 = smov 32   ;;  %s369_s23 = smov 2  }
  0x6f   :  { %297 = dma.vmem_to_hbm [thread:$0]  %s292_s2, 64, %s530_s5, [#allocation3], %s368_s22, %s368_s22, %s369_s23  }
  0x70   :  { %359 = dma.done.wait [#allocation3], 64  }
  0x71   :  { %360 = vsyncadd [#allocation3], 4294967232 }
  0x72   :  { %301 = vsyncpa [#allocation3], 1 }

</bundles_post_ra>
